<compile_context>
chip_gen: v7x
topology: tpu7x:2x2x1
jax: 0.10.0
libtpu: 0.0.40
codegen_flags: <defaults>
</compile_context>

<pallas_src>
import numpy as np
import jax
import jax.numpy as jnp
from jax.experimental import pallas as pl


# ----------------------------------------------------------------------------
# Fused kernel: Conv2d(3x3, pad=1) + bias + ReLU + MaxPool2d(2) + flatten
#               + Linear, single pass, no VMEM scratch.
# ----------------------------------------------------------------------------
def _fused_partition_kernel(xcat_ref, tcat_ref, wfc_ref, bfc_ref, o_ref):
    # xcat_ref: (2*Ho*N, 3*Wp*Cin + 1)  conv-row slabs, rows (hpar, ho, n),
    #           cols (kh, wp, ci) + trailing ones-lane (folds the conv bias)
    # tcat_ref: (3*Wp*Cin + 1, W*Cout)  stacked block-Toeplitz conv weights,
    #           cols (wpar, wo, co); last row = conv bias
    # wfc_ref : (Ho, Wo*Cout, Dpad)     per-ho FC weight blocks, Dout padded
    #           to 128 lanes so the output store is lane-dense
    # bfc_ref : (1, Dpad)
    # o_ref   : (N, Dpad)
    n_batch, _ = o_ref.shape
    half_rows = xcat_ref.shape[0] // 2          # Ho * N
    n_ho = wfc_ref.shape[0]                     # Ho
    half_lanes = wfc_ref.shape[1]               # Wo * Cout

    # Conv(3x3, pad=1) + bias: ONE fused block-Toeplitz matmul.
    conv = jnp.dot(xcat_ref[...], tcat_ref[...],
                   preferred_element_type=jnp.float32)      # (2*Ho*N, W*Cout)

    # MaxPool2d(2) + ReLU entirely in vregs (ReLU commutes with max):
    #   H half: aligned sublane-slice max over the two h-parities,
    #   W half: lane-half max over the two w-parities.
    hpool = jnp.maximum(conv[:half_rows, :], conv[half_rows:, :])
    pooled = jnp.maximum(hpool[:, :half_lanes], hpool[:, half_lanes:])
    pooled = jnp.maximum(pooled, 0.0)                        # (Ho*N, Wo*Cout)

    # Flatten + Linear: per-ho (N, Wo*Cout) @ (Wo*Cout, Dpad) matmuls
    # accumulated in vregs; the host-side wfc permutation reproduces torch's
    # NCHW x.view(N, -1) feature order.  No staging buffer, no masked stores.
    acc = jnp.dot(pooled[:n_batch, :], wfc_ref[0],
                  preferred_element_type=jnp.float32)
    for ho in range(1, n_ho):
        acc = acc + jnp.dot(pooled[ho * n_batch:(ho + 1) * n_batch, :],
                            wfc_ref[ho], preferred_element_type=jnp.float32)
    o_ref[...] = acc + bfc_ref[...]


# ----------------------------------------------------------------------------
# One-time host-side weight packing (torch layouts in, kernel layouts out).
# ----------------------------------------------------------------------------
def prepare_partition_params(conv_w, conv_b, fc_w, fc_b, *, H, W, d_pad=128):
    conv_w = np.asarray(conv_w, np.float32)      # (Cout, Cin, 3, 3) torch OIHW
    conv_b = np.asarray(conv_b, np.float32)      # (Cout,)
    fc_w = np.asarray(fc_w, np.float32)          # (Dout, Cout*Ho*Wo) torch (out,in)
    fc_b = np.asarray(fc_b, np.float32)          # (Dout,)
    Cout, Cin, KH, KW = conv_w.shape
    Dout = fc_w.shape[0]
    Wp = W + 2
    Ho, Wo = H // 2, W // 2

    # Layout assumptions the kernel relies on -- fail loudly otherwise.
    assert H % 2 == 0 and W % 2 == 0, "MaxPool2d(2) layout needs even H, W"
    assert W * Cout == 128, "kernel assumes lane-dense conv output (W*Cout == 128)"
    assert KH == 3 and KW == 3, "kernel specialized to 3x3 SAME conv"
    assert fc_w.shape[1] == Cout * Ho * Wo
    assert Dout <= d_pad

    # Stacked block-Toeplitz conv weight: row (kh, wp, ci), col (wpar, wo, co);
    # last row is the conv bias, matched to xcat's trailing ones-lane.
    k_conv = KH * Wp * Cin
    tcat = np.zeros((k_conv + 1, W * Cout), np.float32)
    for kh in range(KH):
        for kw in range(KW):
            for w in range(W):
                wp = w + kw
                row = kh * Wp * Cin + wp * Cin
                col = (w % 2) * (Wo * Cout) + (w // 2) * Cout
                tcat[row:row + Cin, col:col + Cout] = conv_w[:, :, kh, kw].T
    tcat[k_conv, :] = np.tile(conv_b, W)          # (wpar, wo, co): co fastest

    # FC weight permuted so torch's NCHW x.view(N,-1) order (co, ho, wo) maps
    # onto per-ho (wo, co) blocks; Dout zero-padded to d_pad for a lane-dense
    # kernel output (unmasked stores / full-lane writeback).
    wfc = fc_w.reshape(Dout, Cout, Ho, Wo).transpose(2, 3, 1, 0)   # (ho,wo,co,d)
    wfc = wfc.reshape(Ho, Wo * Cout, Dout)
    wfc_pad = np.zeros((Ho, Wo * Cout, d_pad), np.float32)
    wfc_pad[:, :, :Dout] = wfc
    bfc_pad = np.zeros((1, d_pad), np.float32)
    bfc_pad[0, :Dout] = fc_b

    return (jnp.asarray(tcat), jnp.asarray(wfc_pad), jnp.asarray(bfc_pad))


# ----------------------------------------------------------------------------
# Partition.forward equivalent (single fused pallas_call).
# ----------------------------------------------------------------------------
def partition_forward(x_nchw, packed_params, d_out):
    # TODO(synk): RRef.to_here()/.to('cpu')/parameter_rrefs are torch.distributed
    # RPC plumbing with no kernel equivalent; the tensor is passed in directly.
    tcat, wfc, bfc = packed_params
    N, Cin, H, W = x_nchw.shape
    Wp = W + 2
    Ho = H // 2
    d_pad = wfc.shape[2]
    assert tcat.shape[0] == 3 * Wp * Cin + 1

    # Small XLA input prep on the ~4 KB input (fuses into one copy fusion):
    # NCHW -> NHWC with (w, ci) folded into lanes, zero-pad h and w by 1,
    # build 3-consecutive-row conv slabs, split into the two h-parities with
    # rows ordered (hpar, ho, n), then append the ones-lane for the conv bias.
    x = jnp.transpose(x_nchw, (0, 2, 3, 1)).reshape(N, H, W * Cin)
    xp = jnp.pad(x, ((0, 0), (1, 1), (Cin, Cin)))                # (N, H+2, Wp*Cin)
    rows3 = jnp.concatenate(
        [xp[:, 0:H, :], xp[:, 1:H + 1, :], xp[:, 2:H + 2, :]], axis=-1)
    par = jnp.stack([rows3[:, 0::2, :], rows3[:, 1::2, :]], axis=0)  # (2,N,Ho,K)
    xrows = jnp.transpose(par, (0, 2, 1, 3)).reshape(2 * Ho * N, 3 * Wp * Cin)
    xcat = jnp.concatenate(
        [xrows, jnp.ones((2 * Ho * N, 1), xrows.dtype)], axis=-1)

    # Single no-grid kernel invocation: whole ~0.4 MB f32 working set sits in
    # VMEM on every generation; no pipelining buffers, no HBM round trips.
    # TODO(synk): for large batches add a batch grid axis marked "parallel"
    # (megacore sharding on v7x); pointless at N=2.
    out_pad = pl.pallas_call(
        _fused_partition_kernel,
        out_shape=jax.ShapeDtypeStruct((N, d_pad), jnp.float32),
    )(xcat, tcat, wfc, bfc)
    return out_pad[:, :d_out]


# ----------------------------------------------------------------------------
# Pure-JAX reference (torch semantics) for a correctness check.
# ----------------------------------------------------------------------------
def partition_reference(x_nchw, conv_w, conv_b, fc_w, fc_b):
    y = jax.lax.conv_general_dilated(
        x_nchw, conv_w, window_strides=(1, 1), padding="SAME",
        dimension_numbers=("NCHW", "OIHW", "NCHW"),
        precision=jax.lax.Precision.HIGHEST)
    y = y + conv_b.reshape(1, -1, 1, 1)
    y = jnp.maximum(y, 0.0)
    y = jax.lax.reduce_window(y, -jnp.inf, jax.lax.max,
                              (1, 1, 2, 2), (1, 1, 2, 2), "VALID")
    y = y.reshape(y.shape[0], -1)
    return jnp.dot(y, fc_w.T, precision=jax.lax.Precision.HIGHEST) + fc_b


if __name__ == "__main__":
    key = jax.random.PRNGKey(0)
    k_conv_w, k_conv_b, k_fc_w, k_fc_b, k_x = jax.random.split(key, 5)

    N, Cin, H, W = 2, 4, 16, 16
    Cout, Dout = 8, 32
    fc_in = Cout * (H // 2) * (W // 2)                          # 8 * 8 * 8 = 512

    conv_w = 0.1 * jax.random.normal(k_conv_w, (Cout, Cin, 3, 3), jnp.float32)
    conv_b = 0.1 * jax.random.normal(k_conv_b, (Cout,), jnp.float32)
    fc_w = 0.05 * jax.random.normal(k_fc_w, (Dout, fc_in), jnp.float32)
    fc_b = 0.05 * jax.random.normal(k_fc_b, (Dout,), jnp.float32)
    x = jax.random.normal(k_x, (N, Cin, H, W), jnp.float32)     # NCHW input

    params = prepare_partition_params(conv_w, conv_b, fc_w, fc_b, H=H, W=W)
    fwd = jax.jit(partition_forward, static_argnums=(2,))
    out = jax.block_until_ready(fwd(x, params, Dout))

    assert out.shape == (N, Dout), out.shape
    assert bool(jnp.all(jnp.isfinite(out)))

    ref = partition_reference(x, conv_w, conv_b, fc_w, fc_b)
    max_err = float(jnp.max(jnp.abs(out - ref)))
    # All-f32 operands with f32 MXU accumulation: tightened from 1e-2 so any
    # packing / ordering regression fails loudly.
    assert bool(jnp.allclose(out, ref, atol=5e-5, rtol=5e-5)), max_err

    print("KERNEL_OK")
</pallas_src>

<mosaic_0001>
module attributes {stable_mosaic.version = 11 : i64} {
  func.func @_fused_partition_kernel(%arg0: memref<32x217xf32, #tpu.memory_space<vmem>>, %arg1: memref<217x128xf32, #tpu.memory_space<vmem>>, %arg2: memref<8x64x128xf32, #tpu.memory_space<vmem>>, %arg3: memref<1x128xf32, #tpu.memory_space<vmem>>, %arg4: memref<2x128xf32, #tpu.memory_space<vmem>>) attributes {dimension_semantics = [], scalar_prefetch = 0 : i64, scratch_operands = 0 : i64, tpu.core_type = #tpu.core_type<tc>} {
    %c0 = arith.constant 0 : index
    %c0_0 = arith.constant 0 : index
    %0 = vector.load %arg0[%c0, %c0_0] : memref<32x217xf32, #tpu.memory_space<vmem>>, vector<32x217xf32>
    %c0_1 = arith.constant 0 : index
    %c0_2 = arith.constant 0 : index
    %1 = vector.load %arg1[%c0_1, %c0_2] : memref<217x128xf32, #tpu.memory_space<vmem>>, vector<217x128xf32>
    %cst = arith.constant dense<0.000000e+00> : vector<32x128xf32>
    %2 = tpu.matmul %0, %1, %cst {dimension_numbers = #tpu.dot_dimension_numbers<[1], [0], [0], [1], [0, 0, 1, 1], [], []>} : vector<32x217xf32>, vector<217x128xf32>, vector<32x128xf32> -> vector<32x128xf32>
    %3 = vector.extract_strided_slice %2 {offsets = [0, 0], sizes = [16, 128], strides = [1, 1]} : vector<32x128xf32> to vector<16x128xf32>
    %4 = vector.extract_strided_slice %2 {offsets = [16, 0], sizes = [16, 128], strides = [1, 1]} : vector<32x128xf32> to vector<16x128xf32>
    %5 = arith.maximumf %3, %4 : vector<16x128xf32>
    %6 = vector.extract_strided_slice %5 {offsets = [0, 0], sizes = [16, 64], strides = [1, 1]} : vector<16x128xf32> to vector<16x64xf32>
    %7 = vector.extract_strided_slice %5 {offsets = [0, 64], sizes = [16, 64], strides = [1, 1]} : vector<16x128xf32> to vector<16x64xf32>
    %8 = arith.maximumf %6, %7 : vector<16x64xf32>
    %cst_3 = arith.constant 0.000000e+00 : f32
    %9 = vector.broadcast %cst_3 : f32 to vector<16x64xf32>
    %10 = arith.maximumf %8, %9 : vector<16x64xf32>
    %11 = vector.extract_strided_slice %10 {offsets = [0, 0], sizes = [2, 64], strides = [1, 1]} : vector<16x64xf32> to vector<2x64xf32>
    %c0_4 = arith.constant 0 : index
    %c0_5 = arith.constant 0 : index
    %c0_6 = arith.constant 0 : index
    %12 = vector.load %arg2[%c0_4, %c0_5, %c0_6] : memref<8x64x128xf32, #tpu.memory_space<vmem>>, vector<1x64x128xf32>
    %13 = vector.shape_cast %12 : vector<1x64x128xf32> to vector<64x128xf32>
    %cst_7 = arith.constant dense<0.000000e+00> : vector<2x128xf32>
    %14 = tpu.matmul %11, %13, %cst_7 {dimension_numbers = #tpu.dot_dimension_numbers<[1], [0], [0], [1], [0, 0, 1, 1], [], []>} : vector<2x64xf32>, vector<64x128xf32>, vector<2x128xf32> -> vector<2x128xf32>
    %15 = vector.extract_strided_slice %10 {offsets = [2, 0], sizes = [2, 64], strides = [1, 1]} : vector<16x64xf32> to vector<2x64xf32>
    %c1 = arith.constant 1 : index
    %c0_8 = arith.constant 0 : index
    %c0_9 = arith.constant 0 : index
    %16 = vector.load %arg2[%c1, %c0_8, %c0_9] : memref<8x64x128xf32, #tpu.memory_space<vmem>>, vector<1x64x128xf32>
    %17 = vector.shape_cast %16 : vector<1x64x128xf32> to vector<64x128xf32>
    %cst_10 = arith.constant dense<0.000000e+00> : vector<2x128xf32>
    %18 = tpu.matmul %15, %17, %cst_10 {dimension_numbers = #tpu.dot_dimension_numbers<[1], [0], [0], [1], [0, 0, 1, 1], [], []>} : vector<2x64xf32>, vector<64x128xf32>, vector<2x128xf32> -> vector<2x128xf32>
    %19 = arith.addf %14, %18 : vector<2x128xf32>
    %20 = vector.extract_strided_slice %10 {offsets = [4, 0], sizes = [2, 64], strides = [1, 1]} : vector<16x64xf32> to vector<2x64xf32>
    %c2 = arith.constant 2 : index
    %c0_11 = arith.constant 0 : index
    %c0_12 = arith.constant 0 : index
    %21 = vector.load %arg2[%c2, %c0_11, %c0_12] : memref<8x64x128xf32, #tpu.memory_space<vmem>>, vector<1x64x128xf32>
    %22 = vector.shape_cast %21 : vector<1x64x128xf32> to vector<64x128xf32>
    %cst_13 = arith.constant dense<0.000000e+00> : vector<2x128xf32>
    %23 = tpu.matmul %20, %22, %cst_13 {dimension_numbers = #tpu.dot_dimension_numbers<[1], [0], [0], [1], [0, 0, 1, 1], [], []>} : vector<2x64xf32>, vector<64x128xf32>, vector<2x128xf32> -> vector<2x128xf32>
    %24 = arith.addf %19, %23 : vector<2x128xf32>
    %25 = vector.extract_strided_slice %10 {offsets = [6, 0], sizes = [2, 64], strides = [1, 1]} : vector<16x64xf32> to vector<2x64xf32>
    %c3 = arith.constant 3 : index
    %c0_14 = arith.constant 0 : index
    %c0_15 = arith.constant 0 : index
    %26 = vector.load %arg2[%c3, %c0_14, %c0_15] : memref<8x64x128xf32, #tpu.memory_space<vmem>>, vector<1x64x128xf32>
    %27 = vector.shape_cast %26 : vector<1x64x128xf32> to vector<64x128xf32>
    %cst_16 = arith.constant dense<0.000000e+00> : vector<2x128xf32>
    %28 = tpu.matmul %25, %27, %cst_16 {dimension_numbers = #tpu.dot_dimension_numbers<[1], [0], [0], [1], [0, 0, 1, 1], [], []>} : vector<2x64xf32>, vector<64x128xf32>, vector<2x128xf32> -> vector<2x128xf32>
    %29 = arith.addf %24, %28 : vector<2x128xf32>
    %30 = vector.extract_strided_slice %10 {offsets = [8, 0], sizes = [2, 64], strides = [1, 1]} : vector<16x64xf32> to vector<2x64xf32>
    %c4 = arith.constant 4 : index
    %c0_17 = arith.constant 0 : index
    %c0_18 = arith.constant 0 : index
    %31 = vector.load %arg2[%c4, %c0_17, %c0_18] : memref<8x64x128xf32, #tpu.memory_space<vmem>>, vector<1x64x128xf32>
    %32 = vector.shape_cast %31 : vector<1x64x128xf32> to vector<64x128xf32>
    %cst_19 = arith.constant dense<0.000000e+00> : vector<2x128xf32>
    %33 = tpu.matmul %30, %32, %cst_19 {dimension_numbers = #tpu.dot_dimension_numbers<[1], [0], [0], [1], [0, 0, 1, 1], [], []>} : vector<2x64xf32>, vector<64x128xf32>, vector<2x128xf32> -> vector<2x128xf32>
    %34 = arith.addf %29, %33 : vector<2x128xf32>
    %35 = vector.extract_strided_slice %10 {offsets = [10, 0], sizes = [2, 64], strides = [1, 1]} : vector<16x64xf32> to vector<2x64xf32>
    %c5 = arith.constant 5 : index
    %c0_20 = arith.constant 0 : index
    %c0_21 = arith.constant 0 : index
    %36 = vector.load %arg2[%c5, %c0_20, %c0_21] : memref<8x64x128xf32, #tpu.memory_space<vmem>>, vector<1x64x128xf32>
    %37 = vector.shape_cast %36 : vector<1x64x128xf32> to vector<64x128xf32>
    %cst_22 = arith.constant dense<0.000000e+00> : vector<2x128xf32>
    %38 = tpu.matmul %35, %37, %cst_22 {dimension_numbers = #tpu.dot_dimension_numbers<[1], [0], [0], [1], [0, 0, 1, 1], [], []>} : vector<2x64xf32>, vector<64x128xf32>, vector<2x128xf32> -> vector<2x128xf32>
    %39 = arith.addf %34, %38 : vector<2x128xf32>
    %40 = vector.extract_strided_slice %10 {offsets = [12, 0], sizes = [2, 64], strides = [1, 1]} : vector<16x64xf32> to vector<2x64xf32>
    %c6 = arith.constant 6 : index
    %c0_23 = arith.constant 0 : index
    %c0_24 = arith.constant 0 : index
    %41 = vector.load %arg2[%c6, %c0_23, %c0_24] : memref<8x64x128xf32, #tpu.memory_space<vmem>>, vector<1x64x128xf32>
    %42 = vector.shape_cast %41 : vector<1x64x128xf32> to vector<64x128xf32>
    %cst_25 = arith.constant dense<0.000000e+00> : vector<2x128xf32>
    %43 = tpu.matmul %40, %42, %cst_25 {dimension_numbers = #tpu.dot_dimension_numbers<[1], [0], [0], [1], [0, 0, 1, 1], [], []>} : vector<2x64xf32>, vector<64x128xf32>, vector<2x128xf32> -> vector<2x128xf32>
    %44 = arith.addf %39, %43 : vector<2x128xf32>
    %45 = vector.extract_strided_slice %10 {offsets = [14, 0], sizes = [2, 64], strides = [1, 1]} : vector<16x64xf32> to vector<2x64xf32>
    %c7 = arith.constant 7 : index
    %c0_26 = arith.constant 0 : index
    %c0_27 = arith.constant 0 : index
    %46 = vector.load %arg2[%c7, %c0_26, %c0_27] : memref<8x64x128xf32, #tpu.memory_space<vmem>>, vector<1x64x128xf32>
    %47 = vector.shape_cast %46 : vector<1x64x128xf32> to vector<64x128xf32>
    %cst_28 = arith.constant dense<0.000000e+00> : vector<2x128xf32>
    %48 = tpu.matmul %45, %47, %cst_28 {dimension_numbers = #tpu.dot_dimension_numbers<[1], [0], [0], [1], [0, 0, 1, 1], [], []>} : vector<2x64xf32>, vector<64x128xf32>, vector<2x128xf32> -> vector<2x128xf32>
    %49 = arith.addf %44, %48 : vector<2x128xf32>
    %c0_29 = arith.constant 0 : index
    %c0_30 = arith.constant 0 : index
    %50 = vector.load %arg3[%c0_29, %c0_30] : memref<1x128xf32, #tpu.memory_space<vmem>>, vector<1x128xf32>
    %51 = vector.broadcast %50 : vector<1x128xf32> to vector<2x128xf32>
    %52 = arith.addf %49, %51 : vector<2x128xf32>
    %c0_31 = arith.constant 0 : index
    %c0_32 = arith.constant 0 : index
    %53 = vector.load %arg4[%c0_31, %c0_32] : memref<2x128xf32, #tpu.memory_space<vmem>>, vector<2x128xf32>
    tpu.vector_store %arg4[%c0_31, %c0_32], %52 {strides = array<i32>} : memref<2x128xf32, #tpu.memory_space<vmem>>, vector<2x128xf32>,
    return
  }
}

</mosaic_0001>

<bundles_post_ra>
// kernel: partition_forward.1
= control target key start
LH: loop header
LB: loop body
LE: loop exit
PB: predicated region body
PF: predicated region fallthrough
CT: control target
= control target key end

     0   :  { %v1318_v3 = vmov 0.0|0.0   ;;  %vm54_vm0 = vcmask 728064   ;;  %s1750_s0 = inlined_call_operand.vmem [shape: f32[32,217], index: 0, kind: input, shape index: {}]   ;;  %s1751_s1 = inlined_call_operand.vmem [shape: f32[217,128], index: 1, kind: input, shape index: {}]   ;;  %s1752_s2 = inlined_call_operand.vmem [shape: f32[8,64,128], index: 2, kind: input, shape index: {}]   ;;  %s1753_s3 = inlined_call_operand.vmem [shape: f32[1,128], index: 3, kind: input, shape index: {}]   ;;  %s1754_s4 = inlined_call_operand.hbm [shape: f32[2,128], index: 4, kind: output, shape index: {}]  }
   0x1   :  { %v26_v0 = vld [vmem:[%s1751_s1] sm:$0xff]  ;;  %v27_v1 = vld [vmem:[%s1751_s1 + $0x8] sm:$0xff]  ;;  %v28_v2 = vld [vmem:[%s1751_s1 + $0x10] sm:$0xff]  ;;  %1149 = vmatprep.subr.bf16.mxu0 %v1318_v3  ;;  %1192 = vmatprep.subr.bf16.mxu1 %v1318_v3 }
   0x2   :  { %v1150_v4 = vpack.c.bf16 %v27_v1, %v26_v0  ;;  %v29_v5 = vld [vmem:[%s1751_s1 + $0x18] sm:$0xff]  ;;  %v30_v7 = vld [vmem:[%s1751_s1 + $0x20] sm:$0xff]  ;;  %v31_v8 = vld [vmem:[%s1751_s1 + $0x28] sm:$0xff] }
   0x3   :  { %v1153_v6 = vpack.c.bf16 %v29_v5, %v28_v2  ;;  %v1156_v9 = vpack.c.bf16 %v31_v8, %v30_v7  ;;  %v32_v10 = vld [vmem:[%s1751_s1 + $0x30] sm:$0xff]  ;;  %v33_v11 = vld [vmem:[%s1751_s1 + $0x38] sm:$0xff]  ;;  %v19_v12 = vld [vmem:[%s1750_s0 + $0x8] sm:$0xff] }
   0x4   :  { %1151 = vmatpush1.bf16.msra.mxu0 %v1150_v4  ;;  %856 = vmatprep.mubr.msk.f32.mxu0 %vm54_vm0, %v19_v12  ;;  %v1159_v13 = vpack.c.bf16 %v33_v11, %v32_v10  ;;  %v34_v14 = vld [vmem:[%s1751_s1 + $0x40] sm:$0xff]  ;;  %v35_v15 = vld [vmem:[%s1751_s1 + $0x48] sm:$0xff] }
   0x5   :  { %1152 = vmatprep.subr.bf16.mxu0 %v1318_v3 }
   0x8   :  { %1154 = vmatpush1.bf16.msra.mxu0 %v1153_v6 }
   0x9   :  { %1155 = vmatprep.subr.bf16.mxu0 %v1318_v3 }
   0xc   :  { %1157 = vmatpush1.bf16.msra.mxu0 %v1156_v9 }
   0xd   :  { %1158 = vmatprep.subr.bf16.mxu0 %v1318_v3 }
   0xe   :  { %9 = vsyncpa [#allocation3], 0  ;;  %v1162_v16 = vpack.c.bf16 %v35_v15, %v34_v14  ;;  %v36_v17 = vld [vmem:[%s1751_s1 + $0x50] sm:$0xff]  ;;  %v37_v18 = vld [vmem:[%s1751_s1 + $0x58] sm:$0xff]  ;;  %vm67_vm1 = vcmask 1040384   ;;  %vm1319_vm2 = vmmov 1  }
   0xf   :  { %v1165_v19 = vpack.c.bf16 %v37_v18, %v36_v17  ;;  %v38_v20 = vld [vmem:[%s1751_s1 + $0x60] sm:$0xff]  ;;  %v39_v21 = vld [vmem:[%s1751_s1 + $0x68] sm:$0xff]  ;;  %v40_v23 = vld [vmem:[%s1751_s1 + $0x70] sm:$0xff]  ;;  %vm1320_vm4 = vmmov 0   ;;  %v1321_v14 = vmov 0.0   ;;  %s1322_s12 = smov 64  }
  0x10   :  { %1160 = vmatpush1.bf16.msra.mxu0 %v1159_v13  ;;  %v1168_v22 = vpack.c.bf16 %v39_v21, %v38_v20  ;;  %v41_v24 = vld [vmem:[%s1751_s1 + $0x78] sm:$0xff]  ;;  %v42_v26 = vld [vmem:[%s1751_s1 + $0x80] sm:$0xff]  ;;  %v43_v27 = vld [vmem:[%s1751_s1 + $0x88] sm:$0xff]  ;;  %1013 = vmatprep.mubr.msk.f32.mxu1 %vm1320_vm4, %v1321_v14  ;;  %vm189_vm5 = vcmask 523264  }
  0x11   :  { %1161 = vmatprep.subr.bf16.mxu0 %v1318_v3  ;;  %v1171_v25 = vpack.c.bf16 %v41_v24, %v40_v23  ;;  %v1174_v28 = vpack.c.bf16 %v43_v27, %v42_v26  ;;  %v44_v29 = vld [vmem:[%s1751_s1 + $0x90] sm:$0xff]  ;;  %v45_v30 = vld [vmem:[%s1751_s1 + $0x98] sm:$0xff]  ;;  %v46_v32 = vld [vmem:[%s1751_s1 + $0xa0] sm:$0xff] }
  0x12   :  { %v1177_v31 = vpack.c.bf16 %v45_v30, %v44_v29  ;;  %v47_v33 = vld [vmem:[%s1751_s1 + $0xa8] sm:$0xff]  ;;  %v48_v35 = vld [vmem:[%s1751_s1 + $0xb0] sm:$0xff]  ;;  %v49_v36 = vld [vmem:[%s1751_s1 + $0xb8] sm:$0xff] }
  0x13   :  { %v1180_v34 = vpack.c.bf16 %v47_v33, %v46_v32  ;;  %v1183_v37 = vpack.c.bf16 %v49_v36, %v48_v35  ;;  %v50_v38 = vld [vmem:[%s1751_s1 + $0xc0] sm:$0xff]  ;;  %v51_v39 = vld [vmem:[%s1751_s1 + $0xc8] sm:$0xff]  ;;  %v52_v41 = vld [vmem:[%s1751_s1 + $0xd0] sm:$0xff] }
  0x14   :  { %1163 = vmatpush1.bf16.msra.mxu0 %v1162_v16  ;;  %v1186_v40 = vpack.c.bf16 %v51_v39, %v50_v38  ;;  %v53_v42 = vld [vmem:[%s1751_s1 + $0xd8] sm:$0x1]  ;;  %vm1190_vm3 = vmpackc.low %vm67_vm1, %vm1319_vm2  ;;  %v18_v44 = vld [vmem:[%s1750_s0] sm:$0xff]  ;;  %s1323_s1 = smov [#allocation2]  }
  0x15   :  { %1164 = vmatprep.subr.bf16.mxu0 %v1318_v3  ;;  %v1189_v43 = vpack.c.bf16 %v53_v42, %v52_v41  ;;  %v21_v45 = vld [vmem:[%s1750_s0 + $0x18] sm:$0xff]  ;;  %v20_v46 = vld [vmem:[%s1750_s0 + $0x10] sm:$0xff]  ;;  %v23_v47 = vld [vmem:[%s1750_s0 + $0x28] sm:$0xff]  ;;  %s847_s25 = sshll.u32 %s1323_s1, 4  ;;  %s848_s25 = int_to_ptr.vmem [resolvable:$true] %s847_s25 }
  0x16   :  { %v22_v48 = vld [vmem:[%s1750_s0 + $0x20] sm:$0xff]  ;;  %v25_v49 = vld [vmem:[%s1750_s0 + $0x38] sm:$0xff]  ;;  %v24_v50 = vld [vmem:[%s1750_s0 + $0x30] sm:$0xff]  ;;  %s1294_s26 = scalar_lea.vmem %s848_s25, 32  ;;  %p1299_p1 = scmp.lt.s32.totalorder %s848_s25, %s848_s25 }
  0x17   :  { %v860_v51 = vld [vmem:[%s1752_s2 + $0x40] sm:$0xff]  ;;  %v861_v52 = vld [vmem:[%s1752_s2 + $0x48] sm:$0xff]  ;;  %v862_v56 = vld [vmem:[%s1752_s2 + $0x50] sm:$0xff]  ;;  %p1295_p0 = scmp.ne.s32.totalorder %s848_s25, %s1294_s26  ;;  %p1300_p2 = scmp.lt.s32.totalorder %s1294_s26, %s1294_s26 }
  0x18   :  { %1166 = vmatpush1.bf16.msra.mxu0 %v1165_v19  ;;  %v888_v53 = vld [vmem:[%s1752_s2 + $0x100] sm:$0xff]  ;;  %v1193_v54 = vpack.c.bf16 %v861_v52, %v860_v51  ;;  %v889_v55 = vld [vmem:[%s1752_s2 + $0x108] sm:$0xff]  ;;  %v863_v57 = vld [vmem:[%s1752_s2 + $0x58] sm:$0xff] }
  0x19   :  { %1167 = vmatprep.subr.bf16.mxu0 %v1318_v3  ;;  %v1241_v58 = vpack.c.bf16 %v889_v55, %v888_v53  ;;  %v890_v59 = vld [vmem:[%s1752_s2 + $0x110] sm:$0xff]  ;;  %v891_v60 = vld [vmem:[%s1752_s2 + $0x118] sm:$0xff]  ;;  %v1196_v61 = vpack.c.bf16 %v863_v57, %v862_v56  ;;  %v864_v63 = vld [vmem:[%s1752_s2 + $0x60] sm:$0xff]  ;;  %p1301_p3 = por %p1300_p2, %p1299_p1 }
  0x1a   :  { %1194 = vmatpush3.bf16.msra.mxu1 %v1193_v54  ;;  %v1244_v62 = vpack.c.bf16 %v891_v60, %v890_v59  ;;  %v865_v0 = vld [vmem:[%s1752_s2 + $0x68] sm:$0xff]  ;;  %v892_v2 = vld [vmem:[%s1752_s2 + $0x120] sm:$0xff]  ;;  %v866_v6 = vld [vmem:[%s1752_s2 + $0x70] sm:$0xff] }
  0x1b   :  { %1195 = vmatprep.subr.bf16.mxu1 %v1318_v3  ;;  %v1199_v1 = vpack.c.bf16 %v865_v0, %v864_v63  ;;  %v893_v4 = vld [vmem:[%s1752_s2 + $0x128] sm:$0xff]  ;;  %v867_v7 = vld [vmem:[%s1752_s2 + $0x78] sm:$0xff]  ;;  %v894_v9 = vld [vmem:[%s1752_s2 + $0x130] sm:$0xff]  ;;  %p1302_p4 = pnand %p1301_p3, %p1295_p0 }
  0x1c   :  { %1169 = vmatpush1.bf16.msra.mxu0 %v1168_v22  ;;  %v1247_v5 = vpack.c.bf16 %v893_v4, %v892_v2  ;;  %v1202_v8 = vpack.c.bf16 %v867_v7, %v866_v6  ;;  %v895_v10 = vld [vmem:[%s1752_s2 + $0x138] sm:$0xff]  ;;  %v171_v26 = vld [vmem:[%s1752_s2 + $0x8] sm:$0xff]  ;;  %v908_v38 = vld [vmem:[%s1752_s2 + $0x190] sm:$0xff] }
  0x1d   :  { %1170 = vmatprep.subr.bf16.mxu0 %v1318_v3  ;;  %v1250_v12 = vpack.c.bf16 %v895_v10, %v894_v9  ;;  %v907_v29 = vld [vmem:[%s1752_s2 + $0x188] sm:$0xff]  ;;  %v173_v35 = vld [vmem:[%s1752_s2 + $0x18] sm:$0xff]  ;;  %v174_v41 = vld [vmem:[%s1752_s2 + $0x20] sm:$0xff] }
  0x1e   :  { %1197 = vmatpush3.bf16.msra.mxu1 %v1196_v61  ;;  %v909_v39 = vld [vmem:[%s1752_s2 + $0x198] sm:$0xff]  ;;  %v175_v42 = vld [vmem:[%s1752_s2 + $0x28] sm:$0xff]  ;;  %v870_v53 = vld [vmem:[%s1752_s2 + $0x80] sm:$0xff] }
  0x1f   :  { %1198 = vmatprep.subr.bf16.mxu1 %v1318_v3  ;;  %v913_v51 = vld [vmem:[%s1752_s2 + $0x1b8] sm:$0xff]  ;;  %v871_v54 = vld [vmem:[%s1752_s2 + $0x88] sm:$0xff]  ;;  %v872_v57 = vld [vmem:[%s1752_s2 + $0x90] sm:$0xff] }
  0x20   :  { %1172 = vmatpush1.bf16.msra.mxu0 %v1171_v25  ;;  %v170_v25 = vld [vmem:[%s1752_s2] sm:$0xff]  ;;  %v1217_v56 = vpack.c.bf16 %v871_v54, %v870_v53  ;;  %v876_v0 = vld [vmem:[%s1752_s2 + $0xb0] sm:$0xff]  ;;  %v882_v9 = vld [vmem:[%s1752_s2 + $0xd8] sm:$0xff] }
  0x21   :  { %1173 = vmatprep.subr.bf16.mxu0 %v1318_v3  ;;  %v874_v61 = vld [vmem:[%s1752_s2 + $0xa0] sm:$0xff] }
  0x22   :  { %1200 = vmatpush3.bf16.msra.mxu1 %v1199_v1  ;;  %v877_v1 = vld [vmem:[%s1752_s2 + $0xb8] sm:$0xff]  ;;  %v879_v4 = vld [vmem:[%s1752_s2 + $0xc0] sm:$0xff] }
  0x23   :  { %1201 = vmatprep.subr.bf16.mxu1 %v1318_v3  ;;  %v1226_v2 = vpack.c.bf16 %v877_v1, %v876_v0  ;;  %v924_v0 = vld [vmem:[%s1753_s3] ss:$0 sm:$0xff] }
  0x24   :  { %1175 = vmatpush1.bf16.msra.mxu0 %v1174_v28  ;;  %v906_v28 = vld [vmem:[%s1752_s2 + $0x180] sm:$0xff] }
  0x25   :  { %1176 = vmatprep.subr.bf16.mxu0 %v1318_v3  ;;  %v1265_v36 = vpack.c.bf16 %v907_v29, %v906_v28  ;;  %v903_v28 = vld [vmem:[%s1752_s2 + $0x170] sm:$0xff]  ;;  %v904_v29 = vld [vmem:[%s1752_s2 + $0x178] sm:$0xff] }
  0x26   :  { %1203 = vmatpush3.bf16.msra.mxu1 %v1202_v8  ;;  %v881_v8 = vld [vmem:[%s1752_s2 + $0xd0] sm:$0xff] }
  0x27   :  { %1204 = vmatprep.subr.bf16.mxu1 %v1318_v3  ;;  %v1232_v10 = vpack.c.bf16 %v882_v9, %v881_v8 }
  0x28   :  { %1178 = vmatpush1.bf16.msra.mxu0 %v1177_v31  ;;  %v1205_v31 = vpack.c.bf16 %v171_v26, %v170_v25  ;;  %v901_v25 = vld [vmem:[%s1752_s2 + $0x160] sm:$0xff]  ;;  %v902_v26 = vld [vmem:[%s1752_s2 + $0x168] sm:$0xff] }
  0x29   :  { %1179 = vmatprep.subr.bf16.mxu0 %v1318_v3 }
  0x2c   :  { %1181 = vmatpush1.bf16.msra.mxu0 %v1180_v34  ;;  %v172_v34 = vld [vmem:[%s1752_s2 + $0x10] sm:$0xff] }
  0x2d   :  { %1182 = vmatprep.subr.bf16.mxu0 %v1318_v3 }
  0x30   :  { %1184 = vmatpush1.bf16.msra.mxu0 %v1183_v37 }
  0x31   :  { %1185 = vmatprep.subr.bf16.mxu0 %v1318_v3 }
  0x34   :  { %1187 = vmatpush1.bf16.msra.mxu0 %v1186_v40  ;;  %v1208_v40 = vpack.c.bf16 %v173_v35, %v172_v34  ;;  %v917_v35 = vld [vmem:[%s1752_s2 + $0x1d0] sm:$0xff] }
  0x35   :  { %1188 = vmatprep.subr.bf16.mxu0 %v1318_v3 }
  0x38   :  { %1191 = vmatpush1.bf16.msk.msra.mxu0 %vm1190_vm3, %v1189_v43  ;;  %v1268_v43 = vpack.c.bf16 %v909_v39, %v908_v38  ;;  %v919_v39 = vld [vmem:[%s1752_s2 + $0x1e0] sm:$0xff] }
  0x39   :  { %1240 = vmatprep.subr.bf16.mxu0 %v1318_v3 }
  0x3b   :  { %136 = vmatmul.mubr.f32.vlgmr.msra.gmra.mrb[0].mxu0 %v18_v44  ;;  %v910_v44 = vld [vmem:[%s1752_s2 + $0x1a0] sm:$0xff] }
  0x3c   :  { %857 = vmatprep.mubr.msk.f32.mxu0 %vm54_vm0, %v21_v45  ;;  %1242 = vmatpush3.bf16.msra.mxu0 %v1241_v58  ;;  %v911_v45 = vld [vmem:[%s1752_s2 + $0x1a8] sm:$0xff]  ;;  %v873_v58 = vld [vmem:[%s1752_s2 + $0x98] sm:$0xff] }
  0x3d   :  { %1243 = vmatprep.subr.bf16.mxu0 %v1318_v3  ;;  %v1220_v60 = vpack.c.bf16 %v873_v58, %v872_v57 }
  0x3f   :  { %141 = vmatmul.mubr.f32.gmra.mrb[2].mxu0 %v20_v46  ;;  %v1211_v46 = vpack.c.bf16 %v175_v42, %v174_v41  ;;  %v921_v42 = vld [vmem:[%s1752_s2 + $0x1f0] sm:$0xff] }
  0x40   :  { %858 = vmatprep.mubr.msk.f32.mxu0 %vm54_vm0, %v23_v47  ;;  %1245 = vmatpush3.bf16.msra.mxu0 %v1244_v62  ;;  %v176_v47 = vld [vmem:[%s1752_s2 + $0x30] sm:$0xff]  ;;  %v875_v62 = vld [vmem:[%s1752_s2 + $0xa8] sm:$0xff] }
  0x41   :  { %1246 = vmatprep.subr.bf16.mxu0 %v1318_v3  ;;  %v1223_v63 = vpack.c.bf16 %v875_v62, %v874_v61 }
  0x43   :  { %146 = vmatmul.mubr.f32.gmra.mrb[4].mxu0 %v22_v48  ;;  %v177_v48 = vld [vmem:[%s1752_s2 + $0x38] sm:$0xff] }
  0x44   :  { %859 = vmatprep.mubr.msk.f32.mxu0 %vm54_vm0, %v25_v49  ;;  %1248 = vmatpush3.bf16.msra.mxu0 %v1247_v5  ;;  %v1271_v49 = vpack.c.bf16 %v911_v45, %v910_v44  ;;  %v1214_v52 = vpack.c.bf16 %v177_v48, %v176_v47  ;;  %v880_v5 = vld [vmem:[%s1752_s2 + $0xc8] sm:$0xff] }
  0x45   :  { %1249 = vmatprep.subr.bf16.mxu0 %v1318_v3  ;;  %v1229_v6 = vpack.c.bf16 %v880_v5, %v879_v4 }
  0x47   :  { %151 = vmatmul.mubr.f32.gmra.mrb[6].mxu0 %v24_v50  ;;  %v912_v50 = vld [vmem:[%s1752_s2 + $0x1b0] sm:$0xff] }
  0x48   :  { %1251 = vmatpush3.bf16.msra.mxu0 %v1250_v12  ;;  %1089 = vmatprep.mubr.msk.f32.mxu0 %vm1320_vm4, %v1321_v14  ;;  %v1274_v55 = vpack.c.bf16 %v913_v51, %v912_v50  ;;  %v884_v12 = vld [vmem:[%s1752_s2 + $0xe8] sm:$0xff] }
  0x49   :  { %1264 = vmatprep.subr.bf16.mxu0 %v1318_v3 }
 0x10e   :  { %v137_v11 = vpop.f32.mrb[0].mxu0 }
 0x10f   :  { %v139_v13 = vpop.f32.mrb[1].mxu0 }
 0x112   :  { %v142_v15 = vpop.f32.mrb[2].mxu0 }
 0x113   :  { %v144_v16 = vpop.f32.mrb[3].mxu0 }
 0x114   :  { %v886_v16 = vld [vmem:[%s1752_s2 + $0xf8] sm:$0xff] }
 0x116   :  { %v147_v17 = vpop.f32.mrb[4].mxu0 }
 0x117   :  { %v156_v18 = vmax.f32 %v137_v11, %v147_v17  ;;  %v149_v19 = vpop.f32.mrb[5].mxu0  ;;  %v883_v11 = vld [vmem:[%s1752_s2 + $0xe0] sm:$0xff] }
 0x118   :  { %v1235_v13 = vpack.c.bf16 %v884_v12, %v883_v11  ;;  %v898_v19 = vld [vmem:[%s1752_s2 + $0x148] sm:$0xff] }
 0x119   :  { %160 = vrot.lane.b32.xlu0 %v156_v18, %s1322_s12 }
 0x11a   :  { %v152_v20 = vpop.f32.mrb[6].mxu0 }
 0x11b   :  { %v157_v21 = vmax.f32 %v142_v15, %v152_v20  ;;  %v154_v22 = vpop.f32.mrb[7].mxu0  ;;  %v885_v15 = vld [vmem:[%s1752_s2 + $0xf0] sm:$0xff] }
 0x11c   :  { %v1238_v17 = vpack.c.bf16 %v886_v16, %v885_v15  ;;  %v899_v22 = vld [vmem:[%s1752_s2 + $0x150] sm:$0xff] }
 0x11d   :  { %162 = vrot.lane.b32.xlu0 %v157_v21, %s1322_s12 }
 0x18b   :  { %v161_v23 = vpop.permute.xlu0 %160 }
 0x18c   :  { %v166_v24 = vmax.f32 %v156_v18, %v161_v23  ;;  %v897_v18 = vld [vmem:[%s1752_s2 + $0x140] sm:$0xff]  ;;  %v900_v23 = vld [vmem:[%s1752_s2 + $0x158] sm:$0xff] }
 0x18d   :  { %v1253_v20 = vpack.c.bf16 %v898_v19, %v897_v18 }
 0x18e   :  { %v1543_v27 = vmax.f32 %v166_v24, 0.0  ;;  %v1256_v24 = vpack.c.bf16 %v900_v23, %v899_v22 }
 0x18f   :  { %v163_v30 = vpop.permute.xlu0 %162 }
 0x190   :  { %v167_v32 = vmax.f32 %v157_v21, %v163_v30  ;;  %v188_v33 = vrot.slane %v1543_v27, 2  ;;  %v343_v7 = vrot.slane %v1543_v27, 4  ;;  %v426_v21 = vrot.slane %v1543_v27, 6 }
 0x191   :  { %v1262_v30 = vpack.c.bf16 %v904_v29, %v903_v28 }
 0x192   :  { %v1558_v37 = vmax.f32 %v167_v32, 0.0  ;;  %1014 = vmatmul.mubr.msk.f32.vlgmr.msra.gmra.mrb[0].mxu1 %vm189_vm5, %v188_v33  ;;  %v916_v32 = vld [vmem:[%s1752_s2 + $0x1c8] sm:$0xff] }
 0x193   :  { %1206 = vmatpush3.bf16.msra.mxu1 %v1205_v31  ;;  %1032 = vmatprep.mubr.msk.f32.mxu1 %vm1320_vm4, %v1321_v14  ;;  %v915_v31 = vld [vmem:[%s1752_s2 + $0x1c0] sm:$0xff] }
 0x194   :  { %1090 = vmatmul.mubr.msk.f32.vlgmr.msra.gmra.mrb[8].mxu0 %vm189_vm5, %v1558_v37  ;;  %1207 = vmatprep.subr.bf16.mxu1 %v1318_v3  ;;  %v675_v59 = vrot.slane %v1558_v37, 4  ;;  %v1277_v33 = vpack.c.bf16 %v916_v32, %v915_v31  ;;  %v592_v34 = vrot.slane %v1558_v37, 2  ;;  %v758_v44 = vrot.slane %v1558_v37, 6 }
 0x195   :  { %1266 = vmatpush3.bf16.msra.mxu0 %v1265_v36  ;;  %1127 = vmatprep.mubr.msk.f32.mxu0 %vm1320_vm4, %v1321_v14  ;;  %v918_v36 = vld [vmem:[%s1752_s2 + $0x1d8] sm:$0xff] }
 0x196   :  { %1267 = vmatprep.subr.bf16.mxu0 %v1318_v3  ;;  %v1280_v38 = vpack.c.bf16 %v918_v36, %v917_v35 }
 0x197   :  { %1209 = vmatpush3.bf16.msra.mxu1 %v1208_v40  ;;  %v920_v40 = vld [vmem:[%s1752_s2 + $0x1e8] sm:$0xff] }
 0x198   :  { %1210 = vmatprep.subr.bf16.mxu1 %v1318_v3  ;;  %v1283_v41 = vpack.c.bf16 %v920_v40, %v919_v39 }
 0x199   :  { %1269 = vmatpush3.bf16.msra.mxu0 %v1268_v43 }
 0x19a   :  { %1270 = vmatprep.subr.bf16.mxu0 %v1318_v3 }
 0x19b   :  { %1212 = vmatpush3.bf16.msra.mxu1 %v1211_v46 }
 0x19c   :  { %1213 = vmatprep.subr.bf16.mxu1 %v1318_v3 }
 0x19d   :  { %1272 = vmatpush3.bf16.msra.mxu0 %v1271_v49 }
 0x19e   :  { %1273 = vmatprep.subr.bf16.mxu0 %v1318_v3 }
 0x19f   :  { %1215 = vmatpush3.bf16.msra.mxu1 %v1214_v52 }
 0x1a0   :  { %1216 = vmatprep.subr.bf16.mxu1 %v1318_v3 }
 0x1a1   :  { %1275 = vmatpush3.bf16.msra.mxu0 %v1274_v55 }
 0x1a2   :  { %1033 = vmatmul.mubr.msk.f32.vlgmr.msra.gmra.mrb[2].mxu1 %vm189_vm5, %v1543_v27  ;;  %v1259_v27 = vpack.c.bf16 %v902_v26, %v901_v25 }
 0x1a3   :  { %1218 = vmatpush3.bf16.msra.mxu1 %v1217_v56  ;;  %1051 = vmatprep.mubr.msk.f32.mxu1 %vm1320_vm4, %v1321_v14 }
 0x1a4   :  { %1128 = vmatmul.mubr.msk.f32.vlgmr.msra.gmra.mrb[10].mxu0 %vm189_vm5, %v675_v59  ;;  %1219 = vmatprep.subr.bf16.mxu1 %v1318_v3 }
 0x1a7   :  { %1221 = vmatpush3.bf16.msra.mxu1 %v1220_v60 }
 0x1a8   :  { %1222 = vmatprep.subr.bf16.mxu1 %v1318_v3 }
 0x1ab   :  { %1224 = vmatpush3.bf16.msra.mxu1 %v1223_v63 }
 0x1ac   :  { %1225 = vmatprep.subr.bf16.mxu1 %v1318_v3 }
 0x1af   :  { %1227 = vmatpush3.bf16.msra.mxu1 %v1226_v2 }
 0x1b0   :  { %1228 = vmatprep.subr.bf16.mxu1 %v1318_v3 }
 0x1b2   :  { %1052 = vmatmul.mubr.msk.f32.vlgmr.msra.gmra.mrb[4].mxu1 %vm189_vm5, %v343_v7 }
 0x1b3   :  { %1230 = vmatpush3.bf16.msra.mxu1 %v1229_v6  ;;  %1070 = vmatprep.mubr.msk.f32.mxu1 %vm1320_vm4, %v1321_v14 }
 0x1b4   :  { %1231 = vmatprep.subr.bf16.mxu1 %v1318_v3 }
 0x1b7   :  { %1233 = vmatpush3.bf16.msra.mxu1 %v1232_v10 }
 0x1b8   :  { %1234 = vmatprep.subr.bf16.mxu1 %v1318_v3 }
 0x1bb   :  { %1236 = vmatpush3.bf16.msra.mxu1 %v1235_v13 }
 0x1bc   :  { %1237 = vmatprep.subr.bf16.mxu1 %v1318_v3 }
 0x1bf   :  { %1239 = vmatpush3.bf16.msra.mxu1 %v1238_v17 }
 0x1c0   :  { %1252 = vmatprep.subr.bf16.mxu1 %v1318_v3 }
 0x1c2   :  { %1071 = vmatmul.mubr.msk.f32.vlgmr.msra.gmra.mrb[6].mxu1 %vm189_vm5, %v426_v21 }
 0x1c3   :  { %1254 = vmatpush3.bf16.msra.mxu1 %v1253_v20  ;;  %1108 = vmatprep.mubr.msk.f32.mxu1 %vm1320_vm4, %v1321_v14 }
 0x1c4   :  { %1255 = vmatprep.subr.bf16.mxu1 %v1318_v3 }
 0x1c7   :  { %1257 = vmatpush3.bf16.msra.mxu1 %v1256_v24 }
 0x1c8   :  { %1258 = vmatprep.subr.bf16.mxu1 %v1318_v3 }
 0x1cb   :  { %1260 = vmatpush3.bf16.msra.mxu1 %v1259_v27 }
 0x1cc   :  { %1261 = vmatprep.subr.bf16.mxu1 %v1318_v3 }
 0x1cf   :  { %1263 = vmatpush3.bf16.msra.mxu1 %v1262_v30 }
 0x1d0   :  { %1276 = vmatprep.subr.bf16.mxu1 %v1318_v3 }
 0x1d2   :  { %1109 = vmatmul.mubr.msk.f32.vlgmr.msra.gmra.mrb[8].mxu1 %vm189_vm5, %v592_v34 }
 0x1d3   :  { %1278 = vmatpush3.bf16.msra.mxu1 %v1277_v33  ;;  %1146 = vmatprep.mubr.msk.f32.mxu1 %vm1320_vm4, %v1321_v14  ;;  %v922_v14 = vld [vmem:[%s1752_s2 + $0x1f8] sm:$0xff] }
 0x1d4   :  { %1279 = vmatprep.subr.bf16.mxu1 %v1318_v3  ;;  %v1286_v43 = vpack.c.bf16 %v922_v14, %v921_v42 }
 0x1d7   :  { %1281 = vmatpush3.bf16.msra.mxu1 %v1280_v38 }
 0x1d8   :  { %1282 = vmatprep.subr.bf16.mxu1 %v1318_v3 }
 0x1db   :  { %1284 = vmatpush3.bf16.msra.mxu1 %v1283_v41 }
 0x1dc   :  { %1285 = vmatprep.subr.bf16.mxu1 %v1318_v3 }
 0x1df   :  { %1287 = vmatpush3.bf16.msra.mxu1 %v1286_v43 }
 0x1e2   :  { %1147 = vmatmul.mubr.msk.f32.vlgmr.msra.gmra.mrb[10].mxu1 %vm189_vm5, %v758_v44 }
 0x265   :  { %v258_v45 = vpop.f32.mrb[0].mxu1 }
 0x266   :  { %v1015_v46 = vpop.f32.mrb[1].mxu1 }
 0x267   :  { %v578_v47 = vpop.f32.mrb[8].mxu0 }
 0x268   :  { %v1091_v48 = vpop.f32.mrb[9].mxu0 }
 0x275   :  { %v330_v49 = vpop.f32.mrb[2].mxu1 }
 0x276   :  { %v331_v50 = vadd.f32 %v330_v49, %v258_v45  ;;  %v1034_v51 = vpop.f32.mrb[3].mxu1 }
 0x277   :  { %v744_v52 = vpop.f32.mrb[10].mxu0 }
 0x278   :  { %v1129_v53 = vpop.f32.mrb[11].mxu0 }
 0x285   :  { %v412_v54 = vpop.f32.mrb[4].mxu1 }
 0x286   :  { %v416_v55 = vadd.f32 %v412_v54, %v331_v50  ;;  %v1053_v56 = vpop.f32.mrb[5].mxu1 }
 0x295   :  { %v495_v57 = vpop.f32.mrb[6].mxu1 }
 0x296   :  { %v499_v58 = vadd.f32 %v495_v57, %v416_v55  ;;  %v1072_v3 = vpop.f32.mrb[7].mxu1 }
 0x298   :  { %v582_v59 = vadd.f32 %v578_v47, %v499_v58 }
 0x2a5   :  { %v661_v60 = vpop.f32.mrb[8].mxu1 }
 0x2a6   :  { %v665_v37 = vadd.f32 %v661_v60, %v582_v59  ;;  %v1110_v61 = vpop.f32.mrb[9].mxu1 }
 0x2a8   :  { %v748_v62 = vadd.f32 %v744_v52, %v665_v37 }
 0x2b5   :  { %v827_v63 = vpop.f32.mrb[10].mxu1 }
 0x2b6   :  { %v831_v1 = vadd.f32 %v827_v63, %v748_v62  ;;  %v1148_v2 = vpop.f32.mrb[11].mxu1 }
 0x2b8   :  { %v839_v4 = vadd.f32 %v924_v0, %v831_v1 }
 0x2ba   :  { %840 = vst [vmem:[#allocation2] sm:$0x3] %v839_v4 }
 0x2bb   :  { %1305 = shalt.err (!%p1302_p4)
}
 0x2bc   :  { %s1306_s29 = scalar_lea.hbm %s1754_s4, 32 }
 0x2bd   :  { %p1307_p5 = scmp.ne.s32.totalorder %s1754_s4, %s1306_s29  ;;  %p1310_p6 = scmp.lt.u32.totalorder %s1306_s29, %s1754_s4 }
 0x2bf   :  { %p1312_p7 = pnand %p1310_p6, %p1307_p5 }
 0x2c1   :  { %1315 = shalt.err (!%p1312_p7)
}
 0x2c2   :  { %850 = dma.vmem_to_hbm [thread:$0]  %s848_s25, 32, %s1754_s4, [#allocation3]  }
 0x2c3   :  { %1316 = dma.done.wait [#allocation3], 32  }
 0x2c4   :  { %1317 = vsyncadd [#allocation3], 4294967264 }
 0x2c5   :  { %854 = vsyncpa [#allocation3], 1 }

</bundles_post_ra>
